<compile_context>
chip_gen: v6e
topology: v6e:2x2x1
jax: 0.10.0
libtpu: 0.0.40
codegen_flags: <defaults>
</compile_context>

<pallas_src>
import functools

import numpy as np
import jax
import jax.numpy as jnp
from jax.experimental import pallas as pl
from jax.experimental.pallas import tpu as pltpu

EPS = 1e-5  # PyTorch BatchNorm3d default eps


# ----------------------------- Pallas kernels -------------------------------

def _bn_stats_kernel(x_ref, sum_ref, sq_ref):
    """Per-batch-item, per-channel sum and sum-of-squares.

    x_ref:   (C, T) lane-dense block of x viewed as (N, C, D*H*W)
    sum_ref: (C, 1) partial accumulator for this batch item
    sq_ref:  (C, 1) partial accumulator for this batch item
    """
    @pl.when(pl.program_id(1) == 0)
    def _():
        sum_ref[...] = jnp.zeros(sum_ref.shape, sum_ref.dtype)
        sq_ref[...] = jnp.zeros(sq_ref.shape, sq_ref.dtype)

    xb = x_ref[...].astype(jnp.float32)                      # (C, T)
    sum_ref[...] += jnp.sum(xb, axis=1, keepdims=True)
    sq_ref[...] += jnp.sum(xb * xb, axis=1, keepdims=True)


def _bn_conv3d_kernel(x_ref, scale_ref, shift_ref, w_ref, b_ref, mask_ref,
                      o_ref, col_ref, *, D, H, W, K, Cin, Cout):
    """Fused BatchNorm (affine normalize) + 3-D 'same' conv for one batch item.

    x_ref:     (Cin, DHW)      channel-major, lane-dense input block
    scale_ref: (Cin, 1)        BN scale  (gamma * rsqrt(var+eps))
    shift_ref: (Cin, 1)        BN shift  (beta - mean*scale)
    w_ref:     (Cout, R)       weights, R = K^3*Cin, tap-major / channel-minor cols
    b_ref:     (Cout, 1)       conv bias
    mask_ref:  (K^3, DHW)      precomputed 0/1 boundary masks per tap
    o_ref:     (Cout, DHW)     lane-dense NCDHW-flattened output block
    col_ref:   VMEM (R, DHW)   f32 im2col scratch (contraction on sublanes)
    """
    p = (K - 1) // 2
    HW = H * W

    # Fused BatchNorm: y = x * scale + shift   (per-channel broadcast on lanes)
    x_norm = x_ref[...].astype(jnp.float32) * scale_ref[...] + shift_ref[...]

    # Build the 27 taps by rolling along the flat DHW lane axis and masking the
    # spatial boundaries.  Wherever mask == 1 the roll did not wrap, so the
    # value equals x_norm at the shifted (d,h,w); mask == 0 <=> zero padding
    # (and the BN shift never leaks into the halo).
    t = 0
    for kd in range(K):
        for kh in range(K):
            for kw in range(K):
                off = (kd - p) * HW + (kh - p) * W + (kw - p)
                rolled = x_norm if off == 0 else jnp.roll(x_norm, -off, axis=1)
                col_ref[t * Cin:(t + 1) * Cin, :] = rolled * mask_ref[t:t + 1, :]
                t += 1

    # Single big-contraction MXU matmul, f32 accumulation.
    acc = jnp.dot(w_ref[...], col_ref[...],
                  preferred_element_type=jnp.float32)        # (Cout, DHW)

    # Lane-dense store straight in NCDHW-flattened layout.
    o_ref[...] = (acc + b_ref[...]).astype(o_ref.dtype)


# ----------------------------- Pallas wrappers ------------------------------

def _pick_lane_tile(total, cap=8192):
    """Largest lane-tile <= cap dividing `total` (multiple of 128 if tiled)."""
    if total <= cap:
        return total
    for t in range(cap - cap % 128, 127, -128):
        if total % t == 0:
            return t
    return total  # fallback: one full (legal) block


def _bn_batch_stats(x3):
    """Per-channel (sum, sumsq) over (N, D*H*W).  x3: (N, C, S) -> ((C,), (C,))."""
    N, C, S = x3.shape
    T = _pick_lane_tile(S)
    s, sq = pl.pallas_call(
        _bn_stats_kernel,
        out_shape=(jax.ShapeDtypeStruct((N, C, 1), jnp.float32),
                   jax.ShapeDtypeStruct((N, C, 1), jnp.float32)),
        grid=(N, S // T),
        in_specs=[pl.BlockSpec((None, C, T), lambda n, t: (n, 0, t))],
        out_specs=(pl.BlockSpec((None, C, 1), lambda n, t: (n, 0, 0)),
                   pl.BlockSpec((None, C, 1), lambda n, t: (n, 0, 0))),
        compiler_params=pltpu.CompilerParams(
            dimension_semantics=("parallel", "arbitrary"),
            vmem_limit_bytes=32 * 1024 * 1024),
    )(x3)
    # Tiny (N, C) reduction of the per-item partials in the wrapper.
    return jnp.sum(s[:, :, 0], axis=0), jnp.sum(sq[:, :, 0], axis=0)


def _bn_conv3d_same(x3, scale_col, shift_col, w2t, b_col, masks, *, D, H, W, K):
    """Fused normalize + 'same' conv.  x3: (N, Cin, DHW) -> (N, Cout, DHW) f32."""
    N, Cin, DHW = x3.shape
    Cout = w2t.shape[0]
    R = K * K * K * Cin
    assert K % 2 == 1, "padding='same' implemented for odd kernel sizes"
    kern = functools.partial(_bn_conv3d_kernel,
                             D=D, H=H, W=W, K=K, Cin=Cin, Cout=Cout)
    # NOTE: DHW not a multiple of 128 is still legal (full-dim block) but runs
    # with partially masked lanes; keep spatial volumes 128-aligned if possible.
    return pl.pallas_call(
        kern,
        out_shape=jax.ShapeDtypeStruct((N, Cout, DHW), jnp.float32),
        grid=(N,),
        in_specs=[
            pl.BlockSpec((None, Cin, DHW), lambda n: (n, 0, 0)),
            pl.BlockSpec((Cin, 1), lambda n: (0, 0)),
            pl.BlockSpec((Cin, 1), lambda n: (0, 0)),
            pl.BlockSpec((Cout, R), lambda n: (0, 0)),
            pl.BlockSpec((Cout, 1), lambda n: (0, 0)),
            pl.BlockSpec((K * K * K, DHW), lambda n: (0, 0)),
        ],
        out_specs=pl.BlockSpec((None, Cout, DHW), lambda n: (n, 0, 0)),
        scratch_shapes=[pltpu.VMEM((R, DHW), jnp.float32)],
        compiler_params=pltpu.CompilerParams(
            dimension_semantics=("parallel",),
            vmem_limit_bytes=48 * 1024 * 1024),
    )(x3, scale_col, shift_col, w2t, b_col, masks)


# --------------------------- one-time parameter prep -------------------------

def _make_tap_masks(D, H, W, K):
    """Static 0/1 boundary masks, one row per tap, flattened over (D, H, W)."""
    p = (K - 1) // 2
    d = np.arange(D)[:, None, None]
    h = np.arange(H)[None, :, None]
    w = np.arange(W)[None, None, :]
    rows = []
    for kd in range(K):
        for kh in range(K):
            for kw in range(K):
                dz, dy, dx = kd - p, kh - p, kw - p
                m = ((d + dz >= 0) & (d + dz < D) &
                     (h + dy >= 0) & (h + dy < H) &
                     (w + dx >= 0) & (w + dx < W))
                rows.append(m.reshape(-1))
    return np.stack(rows).astype(np.float32)                # (K^3, D*H*W)


def prepare_batch_norm_conv(conv_w, conv_b, gamma, beta, spatial_shape):
    """Hoisted per-layer prep (weight re-layout + boundary masks), done once."""
    Cout, Cin, K, _, _ = conv_w.shape
    D, H, W = spatial_shape
    # PyTorch Conv3d weight (Cout, Cin, K, K, K) -> (Cout, K^3*Cin),
    # column index = ((kd*K + kh)*K + kw)*Cin + cin  (tap-major, channel-minor).
    w2t = jnp.transpose(conv_w, (0, 2, 3, 4, 1)) \
             .reshape(Cout, K * K * K * Cin).astype(jnp.float32)
    return {
        "w2t": w2t,
        "b_col": conv_b.reshape(Cout, 1).astype(jnp.float32),
        "masks": jnp.asarray(_make_tap_masks(D, H, W, K)),
        "gamma": gamma.astype(jnp.float32),
        "beta": beta.astype(jnp.float32),
        "K": K,
    }


# ------------------------------ module forward ------------------------------

def batch_norm_conv_forward(x_ncdhw, prep, use_norm="BatchNorm"):
    """Forward pass of BatchNormConv.  x: (N, C, D, H, W) f32 -> NCDHW output."""
    N, C, D, H, W = x_ncdhw.shape
    S = D * H * W
    x3 = x_ncdhw.reshape(N, C, S).astype(jnp.float32)        # free reshape

    if use_norm == "BatchNorm":
        # Training-mode BatchNorm3d: biased batch stats over (N, D, H, W).
        # Single-pass E[x^2]-E[x]^2 in f32, clamped at 0 (adequate for
        # activation-scale data; a two-pass formula would need a 3rd HBM read).
        M = N * S
        s, sq = _bn_batch_stats(x3)
        mean = s / M
        var = jnp.maximum(sq / M - mean * mean, 0.0)
        scale = prep["gamma"] * jax.lax.rsqrt(var + EPS)     # (C,)
        shift = prep["beta"] - mean * scale                  # (C,)
    elif use_norm == "None":
        scale = jnp.ones((C,), jnp.float32)
        shift = jnp.zeros((C,), jnp.float32)
    else:
        # TODO(synk): InstanceNorm3d branch (per-(n, c) statistics) not implemented.
        raise NotImplementedError(f"use_norm={use_norm!r}")

    out3 = _bn_conv3d_same(x3,
                           scale.reshape(C, 1), shift.reshape(C, 1),
                           prep["w2t"], prep["b_col"], prep["masks"],
                           D=D, H=H, W=W, K=prep["K"])
    Cout = prep["w2t"].shape[0]
    return out3.reshape(N, Cout, D, H, W)                    # already NCDHW


# ------------------------------ reference (JAX) ------------------------------

def _reference(x, gamma, beta, w, b):
    mean = jnp.mean(x, axis=(0, 2, 3, 4), keepdims=True)
    var = jnp.mean((x - mean) ** 2, axis=(0, 2, 3, 4), keepdims=True)
    xn = (x - mean) * jax.lax.rsqrt(var + EPS)
    xn = xn * gamma.reshape(1, -1, 1, 1, 1) + beta.reshape(1, -1, 1, 1, 1)
    out = jax.lax.conv_general_dilated(
        xn, w, window_strides=(1, 1, 1), padding="SAME",
        dimension_numbers=("NCDHW", "OIDHW", "NCDHW"))
    return out + b.reshape(1, -1, 1, 1, 1)


# ----------------------------------- main ------------------------------------

if __name__ == "__main__":
    N, Cin, Cout, D, H, W, K = 2, 4, 4, 8, 8, 8, 3

    key = jax.random.PRNGKey(0)
    kx, kw, kb = jax.random.split(key, 3)
    x = jax.random.normal(kx, (N, Cin, D, H, W), jnp.float32)

    fan_in = Cin * K ** 3
    bound = 1.0 / (fan_in ** 0.5)
    params = {
        "conv_w": jax.random.uniform(kw, (Cout, Cin, K, K, K), jnp.float32,
                                     -bound, bound),
        "conv_b": jax.random.uniform(kb, (Cout,), jnp.float32, -bound, bound),
        "gamma": jnp.ones((Cin,), jnp.float32),   # BatchNorm3d default weight
        "beta": jnp.zeros((Cin,), jnp.float32),   # BatchNorm3d default bias
    }

    # One-time prep (weight re-layout + tap masks) hoisted out of the forward.
    prep = prepare_batch_norm_conv(params["conv_w"], params["conv_b"],
                                   params["gamma"], params["beta"], (D, H, W))

    out = jax.block_until_ready(
        batch_norm_conv_forward(x, prep, use_norm="BatchNorm"))

    ref = jax.block_until_ready(
        _reference(x, params["gamma"], params["beta"],
                   params["conv_w"], params["conv_b"]))

    assert out.shape == (N, Cout, D, H, W), out.shape
    max_err = float(jnp.max(jnp.abs(out - ref)))
    assert max_err < 1e-2, f"max abs error too large: {max_err}"

    print("KERNEL_OK")
</pallas_src>

<mosaic_0001>
module attributes {stable_mosaic.version = 11 : i64} {
  func.func @_bn_stats_kernel(%arg0: i32, %arg1: i32, %arg2: memref<1x4x512xf32, #tpu.memory_space<vmem>>, %arg3: memref<1x4x1xf32, #tpu.memory_space<vmem>>, %arg4: memref<1x4x1xf32, #tpu.memory_space<vmem>>) attributes {dimension_semantics = [#tpu.dimension_semantics<parallel>, #tpu.dimension_semantics<arbitrary>], iteration_bounds = array<i64: 2, 1>, scalar_prefetch = 0 : i64, scratch_operands = 0 : i64, tpu.core_type = #tpu.core_type<tc>, window_params = [{transform_indices = @transform_0, window_bounds = array<i64: 1, 4, 512>}, {transform_indices = @transform_1, window_bounds = array<i64: 1, 4, 1>}, {transform_indices = @transform_2, window_bounds = array<i64: 1, 4, 1>}]} {
    %c0_i32 = arith.constant 0 : i32
    %0 = arith.cmpi eq, %arg1, %c0_i32 : i32
    %1 = arith.extui %0 : i1 to i32
    %c0_i32_0 = arith.constant 0 : i32
    %2 = arith.cmpi ne, %1, %c0_i32_0 : i32
    scf.if %2 {
      %cst_16 = arith.constant 0.000000e+00 : f32
      %22 = vector.broadcast %cst_16 : f32 to vector<4x1xf32>
      %c0_17 = arith.constant 0 : index
      %c0_18 = arith.constant 0 : index
      %c0_19 = arith.constant 0 : index
      %23 = vector.load %arg3[%c0_17, %c0_18, %c0_19] : memref<1x4x1xf32, #tpu.memory_space<vmem>>, vector<1x4x1xf32>
      %24 = vector.shape_cast %23 : vector<1x4x1xf32> to vector<4x1xf32>
      %25 = vector.shape_cast %22 : vector<4x1xf32> to vector<1x4x1xf32>
      tpu.vector_store %arg3[%c0_17, %c0_18, %c0_19], %25 {strides = array<i32>} : memref<1x4x1xf32, #tpu.memory_space<vmem>>, vector<1x4x1xf32>,
      %cst_20 = arith.constant 0.000000e+00 : f32
      %26 = vector.broadcast %cst_20 : f32 to vector<4x1xf32>
      %c0_21 = arith.constant 0 : index
      %c0_22 = arith.constant 0 : index
      %c0_23 = arith.constant 0 : index
      %27 = vector.load %arg4[%c0_21, %c0_22, %c0_23] : memref<1x4x1xf32, #tpu.memory_space<vmem>>, vector<1x4x1xf32>
      %28 = vector.shape_cast %27 : vector<1x4x1xf32> to vector<4x1xf32>
      %29 = vector.shape_cast %26 : vector<4x1xf32> to vector<1x4x1xf32>
      tpu.vector_store %arg4[%c0_21, %c0_22, %c0_23], %29 {strides = array<i32>} : memref<1x4x1xf32, #tpu.memory_space<vmem>>, vector<1x4x1xf32>,
    } else {
    }
    %c0 = arith.constant 0 : index
    %c0_1 = arith.constant 0 : index
    %c0_2 = arith.constant 0 : index
    %3 = vector.load %arg2[%c0, %c0_1, %c0_2] : memref<1x4x512xf32, #tpu.memory_space<vmem>>, vector<1x4x512xf32>
    %4 = vector.shape_cast %3 : vector<1x4x512xf32> to vector<4x512xf32>
    %c0_3 = arith.constant 0 : index
    %c0_4 = arith.constant 0 : index
    %c0_5 = arith.constant 0 : index
    %5 = vector.load %arg3[%c0_3, %c0_4, %c0_5] : memref<1x4x1xf32, #tpu.memory_space<vmem>>, vector<1x4x1xf32>
    %6 = vector.shape_cast %5 : vector<1x4x1xf32> to vector<4x1xf32>
    %cst = arith.constant dense<0.000000e+00> : vector<4xf32>
    %7 = vector.multi_reduction <add>, %4, %cst [1] : vector<4x512xf32> to vector<4xf32>
    %8 = vector.shape_cast %7 : vector<4xf32> to vector<4x1xf32>
    %9 = arith.addf %6, %8 : vector<4x1xf32>
    %c0_6 = arith.constant 0 : index
    %c0_7 = arith.constant 0 : index
    %c0_8 = arith.constant 0 : index
    %10 = vector.load %arg3[%c0_6, %c0_7, %c0_8] : memref<1x4x1xf32, #tpu.memory_space<vmem>>, vector<1x4x1xf32>
    %11 = vector.shape_cast %10 : vector<1x4x1xf32> to vector<4x1xf32>
    %12 = vector.shape_cast %9 : vector<4x1xf32> to vector<1x4x1xf32>
    tpu.vector_store %arg3[%c0_6, %c0_7, %c0_8], %12 {strides = array<i32>} : memref<1x4x1xf32, #tpu.memory_space<vmem>>, vector<1x4x1xf32>,
    %c0_9 = arith.constant 0 : index
    %c0_10 = arith.constant 0 : index
    %c0_11 = arith.constant 0 : index
    %13 = vector.load %arg4[%c0_9, %c0_10, %c0_11] : memref<1x4x1xf32, #tpu.memory_space<vmem>>, vector<1x4x1xf32>
    %14 = vector.shape_cast %13 : vector<1x4x1xf32> to vector<4x1xf32>
    %15 = arith.mulf %4, %4 : vector<4x512xf32>
    %cst_12 = arith.constant dense<0.000000e+00> : vector<4xf32>
    %16 = vector.multi_reduction <add>, %15, %cst_12 [1] : vector<4x512xf32> to vector<4xf32>
    %17 = vector.shape_cast %16 : vector<4xf32> to vector<4x1xf32>
    %18 = arith.addf %14, %17 : vector<4x1xf32>
    %c0_13 = arith.constant 0 : index
    %c0_14 = arith.constant 0 : index
    %c0_15 = arith.constant 0 : index
    %19 = vector.load %arg4[%c0_13, %c0_14, %c0_15] : memref<1x4x1xf32, #tpu.memory_space<vmem>>, vector<1x4x1xf32>
    %20 = vector.shape_cast %19 : vector<1x4x1xf32> to vector<4x1xf32>
    %21 = vector.shape_cast %18 : vector<4x1xf32> to vector<1x4x1xf32>
    tpu.vector_store %arg4[%c0_13, %c0_14, %c0_15], %21 {strides = array<i32>} : memref<1x4x1xf32, #tpu.memory_space<vmem>>, vector<1x4x1xf32>,
    return
  }
  func.func @transform_0(%arg0: i32, %arg1: i32) -> (i32, i32, i32) {
    %c0_i32 = arith.constant 0 : i32
    %c0_i32_0 = arith.constant 0 : i32
    return %arg0, %c0_i32, %arg1 : i32, i32, i32
  }
  func.func @transform_1(%arg0: i32, %arg1: i32) -> (i32, i32, i32) {
    %c0_i32 = arith.constant 0 : i32
    %c0_i32_0 = arith.constant 0 : i32
    %c0_i32_1 = arith.constant 0 : i32
    return %arg0, %c0_i32, %c0_i32_0 : i32, i32, i32
  }
  func.func @transform_2(%arg0: i32, %arg1: i32) -> (i32, i32, i32) {
    %c0_i32 = arith.constant 0 : i32
    %c0_i32_0 = arith.constant 0 : i32
    %c0_i32_1 = arith.constant 0 : i32
    return %arg0, %c0_i32, %c0_i32_0 : i32, i32, i32
  }
}

</mosaic_0001>

<bundles_post_ra>
// kernel: tpu_custom_call.1
= control target key start
LH: loop header
LB: loop body
LE: loop exit
PB: predicated region body
PF: predicated region fallthrough
CT: control target
= control target key end

     0   :  { %8 = vsyncpa [#allocation3], 0  ;;  %s640_s0 = inlined_call_operand.hbm [shape: f32[2,4,512], index: 0, kind: input, shape index: {}]   ;;  %s641_s1 = inlined_call_operand.vmem [shape: f32[2,4,1], index: 1, kind: output, shape index: {0}]   ;;  %s642_s2 = inlined_call_operand.vmem [shape: f32[2,4,1], index: 2, kind: output, shape index: {1}]  }
   0x1   :  { %10 = vsyncpa [#allocation3 + $0x1], 0  ;;  %s513_s9 = smov 0   ;;  %s515_s10 = smov 0  }
   0x2   :  { %s517_s11 = smov 0   ;;  %s519_s12 = smov 0  }
   0x3   :  { %s521_s13 = smov 0   ;;  %s523_s14 = smov 0  }
   0x4 LB: > { %s344_s15 = sadd.s32 4294967295, %s494_s14   ;;  %s28_s16 = sadd.s32 1, %s490_s13  ;;  %s494_s14 = sphi %s523_s14, %s16_s14   ;;  %s490_s13 = sphi %s521_s13, %s650_s13   ;;  %s486_s12 = sphi %s519_s12, %s649_s12   ;;  %s482_s11 = sphi %s517_s11, %s648_s11   ;;  %s478_s10 = sphi %s515_s10, %s647_s10   ;;  %s474_s9 = sphi %s513_s9, %s646_s9  }
   0x5   : > { %p30_p0 = scmp.ge.s32.totalorder %s28_s16, 2  ;;  %s37_s17 = sadd.s32 1, %s482_s11 }
   0x6   : > { %p44_p1 = scmp.ne.s32.totalorder %s482_s11, %s478_s10  ;;  %p45_p2 = scmp.eq.s32.totalorder %s494_s14, 0 }
   0x7   : > { %s652_s16 = smov (%p30_p0, %s28_s16), 0  ;;  %p50_p4 = scmp.ne.s32.totalorder %s478_s10, %s474_s9 }
   0x8   : > { %p549_p3 = por %p45_p2, %p44_p1  ;;  %s32_s19 = ssub.s32 %s490_s13, %s652_s16 }
   0x9   : > { %p51_p5 = scmp.eq.s32.totalorder %s344_s15, 0  ;;  %p35_p6 = scmp.eq.s32.totalorder %s32_s19, 0 }
   0xa   : > { %p364_p8 = scmp.lt.s32.totalorder %s494_s14, 2  ;;  %s126_s22 = sand.u32 1, %s482_s11  }
   0xb   : > { %p556_p7 = por %p51_p5, %p50_p4  ;;  %s357_s23 = sshll.u32 %s490_s13, 8 }
   0xc   : > { %s562_s21 = scalar_select %p35_p6, %s482_s11, %s37_s17  }
   0xd   : > { %s348_s24 = sshll.u32 %s126_s22, 4  ;;  %s138_s27 = scalar_lea.hbm %s640_s0, %s357_s23 }
   0xe   : > { %s130_s28 = scalar_lea.vmem [#allocation2], %s348_s24  ;;  %p571_p9 = pnand %p364_p8, %p549_p3 }
   0xf   : > { %s140_s29 = sshll.u32 %s130_s28, 4  ;;  %p351_p10 = scmp.ge.s32.totalorder %s494_s14, 1  ;;  %s141_s29 = int_to_ptr.vmem [resolvable:$true] %s140_s29 }
  0x10   : > { %p145_p11 = scmp.lt.s32.totalorder %s494_s14, 3  ;;  %s127_s3 = scalar_lea.sflag [#allocation3], %s126_s22 }
  0x11   : > { %p418_p12 = pneg %p571_p9  ;;  %s429_s4 = scalar_lea.vmem %s141_s29, 256 }
  0x12   : > { %p430_p13 = scmp.ne.s32.totalorder %s141_s29, %s429_s4  ;;  %s496_s5 = smov [#allocation2]  }
  0x13   : > { %s434_s6 = sshll.u32 %s496_s5, 4  ;;  %s435_s6 = int_to_ptr.vmem [resolvable:$false] %s434_s6 }
  0x14   : > { %p432_p0 = pnand %p430_p13, %p418_p12  ;;  %s436_s7 = scalar_lea.vmem %s435_s6, 512 }
  0x15   : > { %p437_p2 = scmp.lt.s32.totalorder %s141_s29, %s435_s6  ;;  %p438_p3 = scmp.lt.s32.totalorder %s436_s7, %s429_s4 }
  0x16   : > { %p433_p1 = pneg %p432_p0 }
  0x17   : > { %p439_p4 = por %p438_p3, %p437_p2 }
  0x19   : > { %p440_p5 = pnand %p439_p4, %p433_p1 }
  0x1b   : > { %443 = shalt.err (!%p440_p5)
}
  0x1c   : > { %363 = dma.hbm_to_vmem [thread:$0]  (!%p571_p9), %s138_s27, 256, %s141_s29, %s127_s3  }
  0x1d   : > { %p146_p6 = pnand %p351_p10, %p145_p11 }
  0x1e   : > { %s151_s8 = sand.u32 (!%p146_p6), 1, %s478_s10  }
  0x1f   : > { %149 = sbr.rel (%p146_p6) target bundleno = 192 (0xc0), region = 24  ;;  %s352_s9 = sshll.u32 (!%p146_p6), %s151_s8, 4 }
  0x20   : > { %s152_s15 = scalar_lea.sflag (!%p146_p6), [#allocation3], %s151_s8  ;;  %s155_s17 = scalar_lea.vmem (!%p146_p6), [#allocation2], %s352_s9 }
  0x24   : > { %469 = dma.done.wait (%p556_p7), %s152_s15, 256  }
  0x25   : > { %471 = vsyncadd (%p556_p7), %s152_s15, 4294967040  ;;  %p180_p8 = scmp.lt.s32.totalorder %s486_s12, 1  ;;  %vm192_vm0 = vcmask 3072   ;;  %vm204_vm1 = vcmask 1043456   ;;  %v497_v0 = vmov 0.0   ;;  %v195_v1 = vld [vmem:[%s155_s17] sm:$0xff] }
  0x26   : > { %v196_v2 = vld [vmem:[%s155_s17 + $0x8] sm:$0xff]  ;;  %v200_v3 = vcombine.high %v195_v1, %v195_v1  ;;  %v205_v5 = vsel %vm204_vm1, %v195_v1, 0.0  ;;  %v218_v6 = vmul.f32 %v195_v1, %v195_v1 }
  0x27   : > { %s654_s12 = smov (!%p180_p8, %s486_s12), 1  ;;  %v201_v4 = vcombine.high %v196_v2, %v196_v2  ;;  %v219_v7 = vmul.f32 %v196_v2, %v196_v2  ;;  %v208_v9 = vsel %vm204_vm1, %v196_v2, 0.0 }
  0x28   : > { %s353_s18 = sshll.u32 %s654_s12, 2  ;;  %v206_v8 = vsel %vm204_vm1, %v200_v3, 0.0  ;;  %v222_v11 = vcombine.high %v218_v6, %v218_v6  ;;  %v226_v13 = vsel %vm204_vm1, %v218_v6, 0.0 }
  0x29   : > { %s600_s23 = scalar_lea.vmem %s641_s1, %s353_s18  ;;  %v207_v10 = vadd.f32 %v206_v8, %v205_v5  ;;  %v223_v12 = vcombine.high %v219_v7, %v219_v7  ;;  %v210_v14 = vsel %vm204_vm1, %v201_v4, 0.0  ;;  %v229_v17 = vsel %vm204_vm1, %v219_v7, 0.0  ;;  %s187_s25 = scalar_lea.vmem %s642_s2, %s353_s18 }
  0x2a   : > { %193 = vst.msk [vmem:[%s600_s23] sm:$0xf] %vm192_vm0, %v497_v0  ;;  %v227_v16 = vsel %vm204_vm1, %v222_v11, 0.0  ;;  %194 = vst.msk [vmem:[%s187_s25] sm:$0xf] %vm192_vm0, %v497_v0 }
  0x2b   : > { %v209_v15 = vadd.f32 %v208_v9, %v207_v10  ;;  %v228_v18 = vadd.f32 %v227_v16, %v226_v13  ;;  %v231_v20 = vsel %vm204_vm1, %v223_v12, 0.0 }
  0x2d   : > { %v211_v19 = vadd.f32 %v210_v14, %v209_v15  ;;  %v230_v21 = vadd.f32 %v229_v17, %v228_v18 }
  0x2f   : > { %212 = vadd.xlane.f32.xlu0 %v211_v19  ;;  %v232_v22 = vadd.f32 %v231_v20, %v230_v21 }
  0x31   : > { %v197_v23 = vld [vmem:[%s600_s23] sm:$0xf] }
  0x32   : > { %v217_v26 = vld [vmem:[%s187_s25] sm:$0xf] }
  0x33   : > { %233 = vadd.xlane.f32.xlu0 %v232_v22 }
  0xb8   : > { %v213_v24 = vpop.xlane.xlu0 %212 }
  0xb9   : > { %v214_v25 = vadd.f32 %v213_v24, %v197_v23 }
  0xbb   : > { %216 = vst.msk [vmem:[%s600_s23] sm:$0xf] %vm192_vm0, %v214_v25 }
  0xbc   : > { %v234_v27 = vpop.xlane.xlu0 %233 }
  0xbd   : > { %v235_v28 = vadd.f32 %v234_v27, %v217_v26 }
  0xbf   : > { %236 = vst.msk [vmem:[%s187_s25] sm:$0xf] %vm192_vm0, %v235_v28 }
  0xc0 PF: > { %s16_s14 = sadd.s32 1, %s494_s14   ;;  %s646_s9 = smov %s478_s10 }
  0xc1   : > { %p13_p7 = scmp.ge.s32.totalorder %s16_s14, 4   ;;  %s647_s10 = smov %s482_s11 }
  0xc2   : > { %s648_s11 = smov %s562_s21  ;;  %s649_s12 = smov %s490_s13 }
  0xc3   : > { %s650_s13 = smov %s652_s16  ;;  %15 = sbr.rel (!%p13_p7) target bundleno = 4 (0x4), region = 80 }
  0xc8   :  { %270 = vsyncpa [#allocation3], 1 }
  0xc9   :  { %272 = vsyncpa [#allocation3 + $0x1], 1 }

</bundles_post_ra>
